<compile_context>
chip_gen: v6e
topology: v6e:2x2x1
jax: 0.10.0
libtpu: 0.0.40
codegen_flags: <defaults>
</compile_context>

<pallas_src>
import functools

import jax
import jax.numpy as jnp
from jax.experimental import pallas as pl
from jax.experimental.pallas import tpu as pltpu

_LANES = 128
_SUBLANES = 8
_ALIGN = _SUBLANES * _LANES       # 1024 elements: keeps rows a multiple of 8
_MIN_KERNEL_ELEMS = 1 << 20       # below ~4 MiB of f32, plain JAX is faster


def _device_kind():
    try:
        return jax.devices()[0].device_kind.lower()
    except Exception:  # pragma: no cover - CPU/interpret fallback
        return ""


def _default_config():
    """(block_rows, core_splits) per TPU generation."""
    kind = _device_kind()
    if "v7" in kind:
        # 2 TensorCores per chip: shard the reduction across both cores.
        return 8192, 2
    if "v6" in kind:
        # Single TC, 32 MiB scoped-VMEM default: 4 MiB tiles double-buffered fit.
        return 8192, 1
    # v5e / v5p / v4 / unknown: smaller scoped-VMEM default, slower HBM.
    return 4096, 1


def _mse_partial_kernel(pred_ref, y_ref, out_ref, acc_ref, *,
                        block_rows, blocks_per_core, n_valid_rows, needs_mask):
    """Accumulate sum((pred - y)^2) for this core's row-block sweep.

    acc_ref : (8, 128) f32 VMEM accumulator (vreg-wise adds only).
    out_ref : (1, 8, 128) per-core partial, written once at the end of the sweep.
    """
    i = pl.program_id(1)   # sequential reduction step

    @pl.when(i == 0)
    def _init():
        acc_ref[...] = jnp.zeros_like(acc_ref)

    d = pred_ref[...].astype(jnp.float32) - y_ref[...].astype(jnp.float32)
    sq = d * d

    if needs_mask:
        # Only compiled when the shape is ragged or the core split pads blocks.
        p = pl.program_id(0)
        base_row = (p * blocks_per_core + i) * block_rows
        is_full = base_row + block_rows <= n_valid_rows

        @pl.when(is_full)
        def _acc_full():
            acc_ref[...] += jnp.sum(sq.reshape(-1, _SUBLANES, _LANES), axis=0)

        @pl.when(jnp.logical_not(is_full))
        def _acc_masked():
            row_ids = base_row + jax.lax.broadcasted_iota(jnp.int32, sq.shape, 0)
            sq_m = jnp.where(row_ids < n_valid_rows, sq, 0.0)
            acc_ref[...] += jnp.sum(sq_m.reshape(-1, _SUBLANES, _LANES), axis=0)
    else:
        # Steady-state hot loop: pure VPU sub/mul/add, no predicates, no iota.
        acc_ref[...] += jnp.sum(sq.reshape(-1, _SUBLANES, _LANES), axis=0)

    @pl.when(i == pl.num_programs(1) - 1)
    def _flush():
        out_ref[...] = acc_ref[...].reshape(out_ref.shape)


def color_loss(pred, y, c=1.0, *, block_rows=None, core_splits=None,
               min_kernel_elems=_MIN_KERNEL_ELEMS):
    """c * mean((pred - y)**2), streaming MSE on TPU via Pallas.

    Pass pred/y in their native storage dtype (e.g. bf16); the kernel upcasts
    per block.  Upcasting before the call would double HBM traffic.
    """
    assert pred.shape == y.shape, (pred.shape, y.shape)
    n_true = pred.size
    c32 = jnp.asarray(c, jnp.float32)          # works for traced or Python c

    if n_true == 0:
        # torch.nn.MSELoss(reduction='mean') on empty input yields NaN.
        return c32 * jnp.float32(jnp.nan)

    dflt_rows, dflt_splits = _default_config()
    if block_rows is None:
        block_rows = dflt_rows
    if core_splits is None:
        core_splits = dflt_splits
    assert block_rows > 0 and block_rows % _SUBLANES == 0
    assert core_splits >= 1

    pred_flat = pred.reshape(-1)   # contiguous reshape: free
    y_flat = y.reshape(-1)

    # (8*128)-aligned main part goes through the kernel; tiny tail in plain JAX.
    n_main = (n_true // _ALIGN) * _ALIGN
    rem = n_true - n_main

    total = jnp.zeros((), jnp.float32)
    if rem:
        dt = (pred_flat[n_main:].astype(jnp.float32)
              - y_flat[n_main:].astype(jnp.float32))
        total = total + jnp.sum(dt * dt)

    if n_main:
        if n_main < min_kernel_elems:
            # Small-input fallback: kernel fixed cost would dominate; XLA fuses
            # this tiny reduce essentially for free.
            dm = (pred_flat[:n_main].astype(jnp.float32)
                  - y_flat[:n_main].astype(jnp.float32))
            total = total + jnp.sum(dm * dm)
        else:
            if rem:
                pred_main, y_main = pred_flat[:n_main], y_flat[:n_main]
            else:
                pred_main, y_main = pred_flat, y_flat
            rows = n_main // _LANES            # always a multiple of 8
            pred2d = pred_main.reshape(rows, _LANES)
            y2d = y_main.reshape(rows, _LANES)

            block_rows_eff = block_rows if rows >= block_rows else rows
            nb_total = pl.cdiv(rows, block_rows_eff)
            # Never split across more cores than there are blocks of work.
            core_splits_eff = min(core_splits, nb_total)
            blocks_per_core = pl.cdiv(nb_total, core_splits_eff)

            # Masking only needed if the last block is ragged or the core split
            # introduces padded (clamped, re-read) blocks.
            needs_mask = (rows % block_rows_eff != 0) or (
                core_splits_eff * blocks_per_core != nb_total)

            if core_splits_eff > 1:
                # v7x: explicitly shard the leading axis across TensorCores.
                dim_sem = (pltpu.CORE_PARALLEL, pltpu.ARBITRARY)
            else:
                dim_sem = (pltpu.ARBITRARY, pltpu.ARBITRARY)

            block_bytes = block_rows_eff * _LANES * pred2d.dtype.itemsize
            # 2 inputs x 2 pipeline buffers + slack for acc/out/internal scratch.
            vmem_limit = int(4 * block_bytes + (8 << 20))

            def in_map(p, i):
                # Clamp so the DMA never reads out of bounds; logically-OOB
                # blocks contribute zero via the in-kernel mask.
                return (jnp.minimum(p * blocks_per_core + i, nb_total - 1), 0)

            kernel = functools.partial(
                _mse_partial_kernel,
                block_rows=block_rows_eff,
                blocks_per_core=blocks_per_core,
                n_valid_rows=rows,
                needs_mask=needs_mask,
            )

            partials = pl.pallas_call(
                kernel,
                out_shape=jax.ShapeDtypeStruct(
                    (core_splits_eff, _SUBLANES, _LANES), jnp.float32),
                grid_spec=pltpu.PrefetchScalarGridSpec(
                    num_scalar_prefetch=0,
                    grid=(core_splits_eff, blocks_per_core),
                    in_specs=[
                        pl.BlockSpec((block_rows_eff, _LANES), in_map),
                        pl.BlockSpec((block_rows_eff, _LANES), in_map),
                    ],
                    out_specs=pl.BlockSpec((1, _SUBLANES, _LANES),
                                           lambda p, i: (p, 0, 0)),
                    scratch_shapes=[pltpu.VMEM((_SUBLANES, _LANES), jnp.float32)],
                ),
                compiler_params=pltpu.CompilerParams(
                    dimension_semantics=dim_sem,
                    vmem_limit_bytes=vmem_limit,
                ),
            )(pred2d, y2d)

            total = total + jnp.sum(partials)

    # Scale applied outside the Mosaic kernel; traced `c` never recompiles it.
    scale = c32 / jnp.float32(n_true)
    return (total * scale).astype(jnp.float32)


if __name__ == "__main__":
    key = jax.random.PRNGKey(0)
    k1, k2, k3, k4 = jax.random.split(key, 4)

    c = 1.0  # ColorLoss(c=1) default

    # 1) NeRF-W style per-ray RGB (num_rays, 3), forced through the kernel.
    pred = jax.random.uniform(k1, (1024, 3), dtype=jnp.float32)
    y = jax.random.uniform(k2, (1024, 3), dtype=jnp.float32)
    loss = jax.block_until_ready(color_loss(pred, y, c=c, min_kernel_elems=0))
    ref = c * jnp.mean((pred - y) ** 2)
    assert jnp.allclose(loss, ref, rtol=1e-5, atol=1e-6), (loss, ref)

    # 2) Ragged element count (not a multiple of 1024): JAX tail + kernel main.
    pred_r = jax.random.uniform(k3, (999, 3), dtype=jnp.float32)
    y_r = jax.random.uniform(k4, (999, 3), dtype=jnp.float32)
    loss_r = jax.block_until_ready(
        color_loss(pred_r, y_r, c=0.5, min_kernel_elems=0))
    ref_r = 0.5 * jnp.mean((pred_r - y_r) ** 2)
    assert jnp.allclose(loss_r, ref_r, rtol=1e-5, atol=1e-6), (loss_r, ref_r)

    # 3) Multi-block sweep (tiny block_rows override) exercising the unmasked
    #    steady-state accumulation path; core_splits=1 keeps the test portable.
    pred_m = jax.random.uniform(k1, (5120, 3), dtype=jnp.float32)
    y_m = jax.random.uniform(k2, (5120, 3), dtype=jnp.float32)
    loss_m = jax.block_until_ready(
        color_loss(pred_m, y_m, c=2.0, block_rows=8, core_splits=1,
                   min_kernel_elems=0))
    ref_m = 2.0 * jnp.mean((pred_m - y_m) ** 2)
    assert jnp.allclose(loss_m, ref_m, rtol=1e-5, atol=1e-6), (loss_m, ref_m)

    # 4) bf16 inputs stream as bf16 (half the HBM bytes); upcast is in-kernel.
    pred_b = jax.random.uniform(k3, (2048, 3), dtype=jnp.float32).astype(jnp.bfloat16)
    y_b = jax.random.uniform(k4, (2048, 3), dtype=jnp.float32).astype(jnp.bfloat16)
    loss_b = jax.block_until_ready(
        color_loss(pred_b, y_b, c=c, min_kernel_elems=0))
    ref_b = c * jnp.mean(
        (pred_b.astype(jnp.float32) - y_b.astype(jnp.float32)) ** 2)
    assert jnp.allclose(loss_b, ref_b, rtol=1e-4, atol=1e-6), (loss_b, ref_b)

    # 5) Default small-input fallback path (no pallas_call).
    loss_s = jax.block_until_ready(color_loss(pred, y, c=c))
    assert jnp.allclose(loss_s, ref, rtol=1e-5, atol=1e-6), (loss_s, ref)

    print("KERNEL_OK")
</pallas_src>

<mosaic_0001>
module attributes {stable_mosaic.version = 11 : i64} {
  func.func @_mse_partial_kernel(%arg0: i32, %arg1: i32, %arg2: memref<24x128xf32, #tpu.memory_space<vmem>>, %arg3: memref<24x128xf32, #tpu.memory_space<vmem>>, %arg4: memref<1x8x128xf32, #tpu.memory_space<vmem>>, %arg5: memref<8x128xf32, #tpu.memory_space<vmem>>) attributes {dimension_semantics = [#tpu.dimension_semantics<arbitrary>, #tpu.dimension_semantics<arbitrary>], iteration_bounds = array<i64: 1, 1>, scalar_prefetch = 0 : i64, scratch_operands = 1 : i64, tpu.core_type = #tpu.core_type<tc>, window_params = [{transform_indices = @transform_0, window_bounds = array<i64: 24, 128>}, {transform_indices = @transform_1, window_bounds = array<i64: 24, 128>}, {transform_indices = @transform_2, window_bounds = array<i64: 1, 8, 128>}]} {
    %c0_i32 = arith.constant 0 : i32
    %0 = arith.cmpi eq, %arg1, %c0_i32 : i32
    %1 = arith.extui %0 : i1 to i32
    %c0_i32_0 = arith.constant 0 : i32
    %2 = arith.cmpi ne, %1, %c0_i32_0 : i32
    scf.if %2 {
      %cst_10 = arith.constant 0.000000e+00 : f32
      %15 = vector.broadcast %cst_10 : f32 to vector<8x128xf32>
      %c0_11 = arith.constant 0 : index
      %c0_12 = arith.constant 0 : index
      %16 = vector.load %arg5[%c0_11, %c0_12] : memref<8x128xf32, #tpu.memory_space<vmem>>, vector<8x128xf32>
      tpu.vector_store %arg5[%c0_11, %c0_12], %15 {strides = array<i32>} : memref<8x128xf32, #tpu.memory_space<vmem>>, vector<8x128xf32>,
    } else {
    }
    %c0 = arith.constant 0 : index
    %c0_1 = arith.constant 0 : index
    %3 = vector.load %arg2[%c0, %c0_1] : memref<24x128xf32, #tpu.memory_space<vmem>>, vector<24x128xf32>
    %c0_2 = arith.constant 0 : index
    %c0_3 = arith.constant 0 : index
    %4 = vector.load %arg3[%c0_2, %c0_3] : memref<24x128xf32, #tpu.memory_space<vmem>>, vector<24x128xf32>
    %5 = arith.subf %3, %4 : vector<24x128xf32>
    %6 = arith.mulf %5, %5 : vector<24x128xf32>
    %c0_4 = arith.constant 0 : index
    %c0_5 = arith.constant 0 : index
    %7 = vector.load %arg5[%c0_4, %c0_5] : memref<8x128xf32, #tpu.memory_space<vmem>>, vector<8x128xf32>
    %8 = vector.shape_cast %6 : vector<24x128xf32> to vector<3x8x128xf32>
    %cst = arith.constant dense<0.000000e+00> : vector<8x128xf32>
    %9 = vector.multi_reduction <add>, %8, %cst [0] : vector<3x8x128xf32> to vector<8x128xf32>
    %10 = arith.addf %7, %9 : vector<8x128xf32>
    %c0_6 = arith.constant 0 : index
    %c0_7 = arith.constant 0 : index
    %11 = vector.load %arg5[%c0_6, %c0_7] : memref<8x128xf32, #tpu.memory_space<vmem>>, vector<8x128xf32>
    tpu.vector_store %arg5[%c0_6, %c0_7], %10 {strides = array<i32>} : memref<8x128xf32, #tpu.memory_space<vmem>>, vector<8x128xf32>,
    %c0_i32_8 = arith.constant 0 : i32
    %12 = arith.cmpi eq, %arg1, %c0_i32_8 : i32
    %13 = arith.extui %12 : i1 to i32
    %c0_i32_9 = arith.constant 0 : i32
    %14 = arith.cmpi ne, %13, %c0_i32_9 : i32
    scf.if %14 {
      %c0_10 = arith.constant 0 : index
      %c0_11 = arith.constant 0 : index
      %15 = vector.load %arg5[%c0_10, %c0_11] : memref<8x128xf32, #tpu.memory_space<vmem>>, vector<8x128xf32>
      %16 = vector.shape_cast %15 : vector<8x128xf32> to vector<1x8x128xf32>
      %c0_12 = arith.constant 0 : index
      %c0_13 = arith.constant 0 : index
      %c0_14 = arith.constant 0 : index
      %17 = vector.load %arg4[%c0_12, %c0_13, %c0_14] : memref<1x8x128xf32, #tpu.memory_space<vmem>>, vector<1x8x128xf32>
      tpu.vector_store %arg4[%c0_12, %c0_13, %c0_14], %16 {strides = array<i32>} : memref<1x8x128xf32, #tpu.memory_space<vmem>>, vector<1x8x128xf32>,
    } else {
    }
    return
  }
  func.func @transform_0(%arg0: i32, %arg1: i32) -> (i32, i32) {
    %c1_i32 = arith.constant 1 : i32
    %0 = arith.muli %arg0, %c1_i32 : i32
    %1 = arith.addi %0, %arg1 : i32
    %c0_i32 = arith.constant 0 : i32
    %2 = arith.minsi %1, %c0_i32 : i32
    %c0_i32_0 = arith.constant 0 : i32
    %c0_i32_1 = arith.constant 0 : i32
    return %2, %c0_i32_0 : i32, i32
  }
  func.func @transform_1(%arg0: i32, %arg1: i32) -> (i32, i32) {
    %c1_i32 = arith.constant 1 : i32
    %0 = arith.muli %arg0, %c1_i32 : i32
    %1 = arith.addi %0, %arg1 : i32
    %c0_i32 = arith.constant 0 : i32
    %2 = arith.minsi %1, %c0_i32 : i32
    %c0_i32_0 = arith.constant 0 : i32
    %c0_i32_1 = arith.constant 0 : i32
    return %2, %c0_i32_0 : i32, i32
  }
  func.func @transform_2(%arg0: i32, %arg1: i32) -> (i32, i32, i32) {
    %c0_i32 = arith.constant 0 : i32
    %c0_i32_0 = arith.constant 0 : i32
    %c0_i32_1 = arith.constant 0 : i32
    return %arg0, %c0_i32, %c0_i32_0 : i32, i32, i32
  }
}

</mosaic_0001>

<bundles_post_ra>
// kernel: tpu_custom_call.1
= control target key start
LH: loop header
LB: loop body
LE: loop exit
PB: predicated region body
PF: predicated region fallthrough
CT: control target
= control target key end

     0   :  { %7 = vsyncpa [#allocation4], 0  ;;  %s207_s0 = inlined_call_operand.hbm [shape: f32[24,128], index: 0, kind: input, shape index: {}]   ;;  %s208_s1 = inlined_call_operand.hbm [shape: f32[24,128], index: 1, kind: input, shape index: {}]   ;;  %s209_s2 = inlined_call_operand.hbm [shape: f32[1,8,128], index: 2, kind: output, shape index: {}]  }
   0x1   :  { %8 = vsyncpa [#allocation7], 0 }
   0x2   :  { %9 = vsyncpa [#allocation5], 0  ;;  %s178_s9 = smov [#allocation3]  }
   0x3   :  { %s21_s10 = sshll.u32 %s178_s9, 4  ;;  %s22_s10 = int_to_ptr.vmem [resolvable:$true] %s21_s10 }
   0x4   :  { %s120_s11 = scalar_lea.vmem %s22_s10, 384  ;;  %p125_p1 = scmp.lt.s32.totalorder %s22_s10, %s22_s10 }
   0x5   :  { %p121_p0 = scmp.ne.s32.totalorder %s22_s10, %s120_s11  ;;  %p126_p2 = scmp.lt.s32.totalorder %s120_s11, %s120_s11 }
   0x7   :  { %p127_p3 = por %p126_p2, %p125_p1 }
   0x9   :  { %p128_p4 = pnand %p127_p3, %p121_p0 }
   0xb   :  { %131 = shalt.err (!%p128_p4)
}
   0xc   :  { %s179_s12 = smov 128   ;;  %s180_s13 = smov 8  }
   0xd   :  { %27 = dma.hbm_to_vmem [thread:$0]  %s207_s0, 384, %s22_s10, [#allocation4], %s179_s12, %s179_s12, %s180_s13  }
   0xe   :  { %s181_s16 = smov [#allocation6]  }
   0xf   :  { %s39_s17 = sshll.u32 %s181_s16, 4  ;;  %s40_s17 = int_to_ptr.vmem [resolvable:$true] %s39_s17 }
  0x10   :  { %s140_s18 = scalar_lea.vmem %s40_s17, 384  ;;  %p145_p6 = scmp.lt.s32.totalorder %s40_s17, %s40_s17 }
  0x11   :  { %p141_p5 = scmp.ne.s32.totalorder %s40_s17, %s140_s18  ;;  %p146_p7 = scmp.lt.s32.totalorder %s140_s18, %s140_s18 }
  0x13   :  { %p147_p8 = por %p146_p7, %p145_p6 }
  0x15   :  { %p148_p9 = pnand %p147_p8, %p141_p5 }
  0x17   :  { %151 = shalt.err (!%p148_p9)
}
  0x18   :  { %45 = dma.hbm_to_vmem [thread:$0]  %s208_s1, 384, %s40_s17, [#allocation7], %s179_s12, %s179_s12, %s180_s13  }
  0x19   :  { %172 = dma.done.wait [#allocation4], 384  }
  0x1a   :  { %173 = vsyncadd [#allocation4], 4294966912 }
  0x1b   :  { %174 = dma.done.wait [#allocation7], 384  }
  0x1c   :  { %175 = vsyncadd [#allocation7], 4294966912  ;;  %v65_v0 = vld [vmem:[#allocation3] sm:$0xff]  ;;  %v66_v1 = vld [vmem:[#allocation3 + $0x8] sm:$0xff]  ;;  %s182_s0 = smov [#allocation8]  }
  0x1d   :  { %v67_v2 = vld [vmem:[#allocation3 + $0x10] sm:$0xff]  ;;  %v68_v3 = vld [vmem:[#allocation6] sm:$0xff]  ;;  %v69_v4 = vld [vmem:[#allocation6 + $0x8] sm:$0xff]  ;;  %s93_s21 = sshll.u32 %s182_s0, 4  ;;  %s94_s21 = int_to_ptr.vmem [resolvable:$true] %s93_s21 }
  0x1e   :  { %v70_v5 = vld [vmem:[#allocation6 + $0x10] sm:$0xff]  ;;  %v71_v6 = vsub.f32 %v65_v0, %v68_v3  ;;  %v72_v7 = vsub.f32 %v66_v1, %v69_v4  ;;  %s152_s1 = scalar_lea.vmem %s94_s21, 128  ;;  %p157_p11 = scmp.lt.s32.totalorder %s94_s21, %s94_s21 }
  0x1f   :  { %v73_v8 = vsub.f32 %v67_v2, %v70_v5  ;;  %p153_p10 = scmp.ne.s32.totalorder %s94_s21, %s152_s1  ;;  %p158_p12 = scmp.lt.s32.totalorder %s152_s1, %s152_s1 }
  0x20   :  { %v74_v9 = vmul.f32 %v71_v6, %v71_v6  ;;  %v75_v10 = vmul.f32 %v72_v7, %v72_v7 }
  0x21   :  { %v76_v11 = vmul.f32 %v73_v8, %v73_v8  ;;  %p159_p13 = por %p158_p12, %p157_p11 }
  0x22   :  { %v78_v12 = vadd.f32 %v75_v10, %v74_v9 }
  0x23   :  { %p160_p0 = pnand %p159_p13, %p153_p10 }
  0x24   :  { %v79_v13 = vadd.f32 %v78_v12, %v76_v11 }
  0x26   :  { %86 = vst [vmem:[#allocation8] sm:$0xff] %v79_v13 }
  0x27   :  { %163 = shalt.err (!%p160_p0)
}
  0x28   :  { %96 = dma.vmem_to_hbm [thread:$0]  %s94_s21, 128, %s209_s2, [#allocation5]  }
  0x29   :  { %176 = dma.done.wait [#allocation5], 128  }
  0x2a   :  { %177 = vsyncadd [#allocation5], 4294967168 }
  0x2b   :  { %100 = vsyncpa [#allocation4], 1 }
  0x2c   :  { %101 = vsyncpa [#allocation7], 1 }
  0x2d   :  { %102 = vsyncpa [#allocation5], 1 }

</bundles_post_ra>
